<compile_context>
chip_gen: v7x
topology: tpu7x:2x2x1
jax: 0.10.0
libtpu: 0.0.40
codegen_flags: <defaults>
</compile_context>

<pallas_src>
import functools

import jax
import jax.numpy as jnp
from jax import lax
from jax.experimental import pallas as pl
from jax.experimental.pallas import tpu as pltpu

_LANES = 128
_SUBLANES = 8


def _modulating_pow(x, gamma):
    """x**gamma with an integer fast path (gamma=2 -> x*x, no exp/log)."""
    g = float(gamma)
    if g == int(g) and int(g) >= 0:
        n = int(g)
        if n == 0:
            return jnp.ones_like(x)
        r = x
        for _ in range(n - 1):
            r = r * x
        return r
    return jnp.power(x, jnp.float32(g))


def _focal_fused_kernel(prob_ref, tgt_ref, out_ref, *, num_classes, spr,
                        m_valid, block_rows, strip, gamma, alpha, mask_tail):
    """One grid step: (block_rows, 128) slab of probs + (block_rows, spr)
    targets -> (1, 8, 128) partial sum of the focal loss."""
    c = num_classes

    # ---- per-block constants, hoisted out of the strip loop --------------
    lane_f = lax.broadcasted_iota(jnp.int32, (strip, _LANES), 1).astype(jnp.float32)
    # slot / class of every lane computed in f32 (exact for these small ints,
    # avoids integer div/mod by a possibly non-power-of-two constant).
    slot_f = jnp.floor((lane_f + 0.5) * jnp.float32(1.0 / c))
    cls_f = lane_f - slot_f * jnp.float32(c)

    if spr > 1:
        sl_lane = lax.broadcasted_iota(jnp.int32, (spr, _LANES), 1).astype(jnp.float32)
        sl_slot = jnp.floor((sl_lane + 0.5) * jnp.float32(1.0 / c))
        sl_row = lax.broadcasted_iota(jnp.int32, (spr, _LANES), 0).astype(jnp.float32)
        sel = (sl_slot == sl_row).astype(jnp.float32)        # (spr, 128) 0/1
    if mask_tail:
        row_i = lax.broadcasted_iota(jnp.int32, (strip, _LANES), 0)
        base_row = pl.program_id(0) * block_rows

    neg_alpha = jnp.float32(-alpha)          # sign of (-log pt) folded in here
    alpha_m1 = jnp.float32(alpha - 1.0)

    def strip_body(i, acc):
        r0 = pl.multiple_of(i * strip, strip)
        p = prob_ref[pl.ds(r0, strip), :].astype(jnp.float32)     # (strip, 128)
        t = tgt_ref[pl.ds(r0, strip), :].astype(jnp.float32)      # (strip, spr)
        if spr > 1:
            # Expand per-sample targets to per-lane on the (idle) MXU.
            tgt_lane = jnp.dot(t, sel, preferred_element_type=jnp.float32)
        else:
            tgt_lane = jnp.broadcast_to(t, (strip, _LANES))
        pos = tgt_lane == cls_f      # exact integer compare; label==C -> all False
        pt = jnp.where(pos, p, 1.0 - p)
        log_pt = jnp.maximum(jnp.log(pt), jnp.float32(-100.0))    # F.bce clamp
        aw_neg = jnp.where(pos, neg_alpha, alpha_m1)
        contrib = aw_neg * _modulating_pow(1.0 - pt, gamma) * log_pt   # >= 0
        if mask_tail:
            valid = (base_row + r0 + row_i) < m_valid
            contrib = jnp.where(valid, contrib, jnp.float32(0.0))
        return acc + jnp.sum(
            contrib.reshape(strip // _SUBLANES, _SUBLANES, _LANES), axis=0)

    acc = lax.fori_loop(0, block_rows // strip, strip_body,
                        jnp.zeros((_SUBLANES, _LANES), jnp.float32))
    out_ref[...] = acc.reshape(1, _SUBLANES, _LANES)


def _pick_strip(block_rows):
    for s in (512, 256, 128, 64, 32, 16, 8):
        if block_rows % s == 0:
            return s
    return block_rows


def _focal_elementwise_jax(prob, target, *, gamma, alpha):
    """Plain-XLA elementwise focal loss (fallback for misaligned shapes)."""
    n, c = prob.shape
    p = prob.astype(jnp.float32)
    pos = jnp.arange(c, dtype=jnp.int32)[None, :] == target[:, None]
    pt = jnp.where(pos, p, 1.0 - p)
    ce = -jnp.maximum(jnp.log(pt), -100.0)
    aw = jnp.where(pos, alpha, 1.0 - alpha)
    return aw * jnp.power(1.0 - pt, gamma) * ce


def focal_loss_with_prob_pallas(prob, target, *, gamma=2.0, alpha=0.25,
                                loss_weight=1.0, reduction="mean",
                                weight=None, avg_factor=None,
                                max_block_rows=4096):
    """prob: [N, C] probabilities (f32 or bf16); target: [N] int labels in
    [0, C] where C means background (all-zero one-hot row)."""
    if weight is not None:
        # TODO(synk): per-sample `weight` path of weight_reduce_loss not wired up.
        raise NotImplementedError("per-sample weight is not supported")
    if reduction not in ("mean", "sum"):
        # TODO(synk): 'none' reduction (per-element loss map) not wired up.
        raise NotImplementedError(reduction)
    if avg_factor is not None and reduction == "sum":
        raise ValueError("avg_factor cannot be used with reduction='sum'")

    n, c = prob.shape
    tgt = target.astype(jnp.int32)
    total = n * c

    spr = _LANES // c if (1 <= c <= _LANES and _LANES % c == 0) else 0
    fast = (spr > 0) and (n % spr == 0) and ((n // spr) % _SUBLANES == 0)

    if not fast:
        # TODO(synk): (N, C) shapes that don't pack exactly into 128-lane rows
        # fall back to plain XLA (a lane-dense view would need a padded HBM copy).
        loss_sum = jnp.sum(
            _focal_elementwise_jax(prob, tgt, gamma=gamma, alpha=alpha),
            dtype=jnp.float32)
    else:
        m = n // spr                              # lane-dense rows: N*C == m*128
        prob2d = prob.reshape(m, _LANES)          # free: contiguous row-major view
        tgt2d = tgt.reshape(m, spr)               # free

        max_block_rows = max(_SUBLANES, (max_block_rows // _SUBLANES) * _SUBLANES)
        block_rows = min(max_block_rows, m)
        strip = _pick_strip(block_rows)
        num_blocks = pl.cdiv(m, block_rows)
        mask_tail = (m % block_rows) != 0         # only last grid block is ragged

        kernel = functools.partial(
            _focal_fused_kernel, num_classes=c, spr=spr, m_valid=m,
            block_rows=block_rows, strip=strip, gamma=gamma, alpha=alpha,
            mask_tail=mask_tail)

        cost = pl.CostEstimate(
            flops=int((10 + 2 * spr) * total),
            transcendentals=int(total),
            bytes_accessed=int(total * prob.dtype.itemsize + n * 4
                               + num_blocks * _SUBLANES * _LANES * 4))

        partials = pl.pallas_call(
            kernel,
            out_shape=jax.ShapeDtypeStruct((num_blocks, _SUBLANES, _LANES),
                                           jnp.float32),
            grid_spec=pltpu.PrefetchScalarGridSpec(
                num_scalar_prefetch=0,
                grid=(num_blocks,),
                in_specs=[
                    pl.BlockSpec((block_rows, _LANES), lambda i: (i, 0)),
                    pl.BlockSpec((block_rows, spr), lambda i: (i, 0)),
                ],
                out_specs=pl.BlockSpec((1, _SUBLANES, _LANES),
                                       lambda i: (i, 0, 0)),
            ),
            compiler_params=pltpu.CompilerParams(
                dimension_semantics=("parallel",)),
            cost_estimate=cost,
        )(prob2d, tgt2d)
        loss_sum = jnp.sum(partials, dtype=jnp.float32)

    if reduction == "mean":
        denom = jnp.float32(total) if avg_factor is None else jnp.float32(avg_factor)
        loss = loss_sum / denom
    else:
        loss = loss_sum
    return jnp.float32(loss_weight) * loss


def _focal_loss_reference(prob, target, *, gamma=2.0, alpha=0.25,
                          loss_weight=1.0):
    """Direct transcription of the PyTorch focal_loss_with_prob ('mean')."""
    n, c = prob.shape
    p = prob.astype(jnp.float32)
    one_hot = jax.nn.one_hot(target, c + 1, dtype=jnp.float32)[:, :-1]
    alpha_w = jnp.where(one_hot == 1, alpha, 1.0 - alpha)
    pt = jnp.where(one_hot == 1, p, 1.0 - p)
    ce = -(one_hot * jnp.maximum(jnp.log(p), -100.0)
           + (1.0 - one_hot) * jnp.maximum(jnp.log(1.0 - p), -100.0))
    loss = alpha_w * jnp.power(1.0 - pt, gamma) * ce
    return loss_weight * jnp.mean(loss)


if __name__ == "__main__":
    key = jax.random.PRNGKey(0)
    k_prob, k_tgt = jax.random.split(key)

    N, C = 256, 16  # small synthetic shapes: 256 samples, 16 foreground classes
    # probabilities in (0, 1) (module expects already-sigmoided predictions)
    prob = jax.nn.sigmoid(jax.random.normal(k_prob, (N, C), dtype=jnp.float32))
    # labels in [0, C]; value C means "background" (no positive class)
    target = jax.random.randint(k_tgt, (N,), 0, C + 1, dtype=jnp.int32)

    out = focal_loss_with_prob_pallas(prob, target,
                                      gamma=2.0, alpha=0.25, loss_weight=1.0)
    out = jax.block_until_ready(out)

    ref = _focal_loss_reference(prob, target, gamma=2.0, alpha=0.25,
                                loss_weight=1.0)
    assert jnp.allclose(out, ref, rtol=1e-5, atol=1e-6), (out, ref)

    # Also exercise the multi-block grid + ragged-tail masking path
    # (m=32 lane-dense rows split into 24-row blocks -> 2 blocks, last ragged).
    out_ragged = focal_loss_with_prob_pallas(prob, target, gamma=2.0,
                                             alpha=0.25, loss_weight=1.0,
                                             max_block_rows=24)
    out_ragged = jax.block_until_ready(out_ragged)
    assert jnp.allclose(out_ragged, ref, rtol=1e-5, atol=1e-6), (out_ragged, ref)

    print("KERNEL_OK")
</pallas_src>

<mosaic_0001>
module attributes {stable_mosaic.version = 11 : i64} {
  func.func @_focal_fused_kernel(%arg0: i32, %arg1: memref<32x128xf32, #tpu.memory_space<vmem>>, %arg2: memref<32x8xi32, #tpu.memory_space<vmem>>, %arg3: memref<1x8x128xf32, #tpu.memory_space<vmem>>) attributes {dimension_semantics = [#tpu.dimension_semantics<parallel>], iteration_bounds = array<i64: 1>, scalar_prefetch = 0 : i64, scratch_operands = 0 : i64, tpu.core_type = #tpu.core_type<tc>, window_params = [{transform_indices = @transform_0, window_bounds = array<i64: 32, 128>}, {transform_indices = @transform_1, window_bounds = array<i64: 32, 8>}, {transform_indices = @transform_2, window_bounds = array<i64: 1, 8, 128>}]} {
    %0 = tpu.iota {dimensions = array<i32: 1>} : vector<32x128xi32>
    %1 = arith.sitofp %0 : vector<32x128xi32> to vector<32x128xf32>
    %cst = arith.constant 5.000000e-01 : f32
    %2 = vector.broadcast %cst : f32 to vector<32x128xf32>
    %3 = arith.addf %1, %2 : vector<32x128xf32>
    %cst_0 = arith.constant 6.250000e-02 : f32
    %4 = vector.broadcast %cst_0 : f32 to vector<32x128xf32>
    %5 = arith.mulf %3, %4 : vector<32x128xf32>
    %6 = math.floor %5 : vector<32x128xf32>
    %cst_1 = arith.constant 1.600000e+01 : f32
    %7 = vector.broadcast %cst_1 : f32 to vector<32x128xf32>
    %8 = arith.mulf %6, %7 : vector<32x128xf32>
    %9 = arith.subf %1, %8 : vector<32x128xf32>
    %10 = tpu.iota {dimensions = array<i32: 1>} : vector<8x128xi32>
    %11 = arith.sitofp %10 : vector<8x128xi32> to vector<8x128xf32>
    %cst_2 = arith.constant 5.000000e-01 : f32
    %12 = vector.broadcast %cst_2 : f32 to vector<8x128xf32>
    %13 = arith.addf %11, %12 : vector<8x128xf32>
    %cst_3 = arith.constant 6.250000e-02 : f32
    %14 = vector.broadcast %cst_3 : f32 to vector<8x128xf32>
    %15 = arith.mulf %13, %14 : vector<8x128xf32>
    %16 = math.floor %15 : vector<8x128xf32>
    %17 = tpu.iota {dimensions = array<i32: 0>} : vector<8x128xi32>
    %18 = arith.sitofp %17 : vector<8x128xi32> to vector<8x128xf32>
    %19 = arith.cmpf oeq, %16, %18 : vector<8x128xf32>
    %20 = arith.extui %19 : vector<8x128xi1> to vector<8x128xi32>
    %21 = arith.sitofp %20 : vector<8x128xi32> to vector<8x128xf32>
    %cst_4 = arith.constant 0.000000e+00 : f32
    %22 = vector.broadcast %cst_4 : f32 to vector<8x128xf32>
    %cst_5 = arith.constant -2.500000e-01 : f32
    %cst_6 = arith.constant -7.500000e-01 : f32
    %c0_i32 = arith.constant 0 : i32
    %c32_i32 = arith.constant 32 : i32
    %23 = arith.muli %c0_i32, %c32_i32 : i32
    %24 = tpu.assume_multiple %23, 32 : i32
    %25 = arith.index_cast %24 : i32 to index
    %c0 = arith.constant 0 : index
    %26 = vector.load %arg1[%25, %c0] : memref<32x128xf32, #tpu.memory_space<vmem>>, vector<32x128xf32>
    %27 = arith.index_cast %24 : i32 to index
    %c0_7 = arith.constant 0 : index
    %28 = vector.load %arg2[%27, %c0_7] : memref<32x8xi32, #tpu.memory_space<vmem>>, vector<32x8xi32>
    %29 = arith.sitofp %28 : vector<32x8xi32> to vector<32x8xf32>
    %cst_8 = arith.constant dense<0.000000e+00> : vector<32x128xf32>
    %30 = tpu.matmul %29, %21, %cst_8 {dimension_numbers = #tpu.dot_dimension_numbers<[1], [0], [0], [1], [0, 0, 1, 1], [], []>} : vector<32x8xf32>, vector<8x128xf32>, vector<32x128xf32> -> vector<32x128xf32>
    %31 = arith.cmpf oeq, %30, %9 : vector<32x128xf32>
    %cst_9 = arith.constant 1.000000e+00 : f32
    %32 = vector.broadcast %cst_9 : f32 to vector<32x128xf32>
    %33 = arith.subf %32, %26 : vector<32x128xf32>
    %34 = arith.select %31, %26, %33 : vector<32x128xi1>, vector<32x128xf32>
    %35 = math.log %34 : vector<32x128xf32>
    %cst_10 = arith.constant -1.000000e+02 : f32
    %36 = vector.broadcast %cst_10 : f32 to vector<32x128xf32>
    %37 = arith.maximumf %35, %36 : vector<32x128xf32>
    %38 = vector.broadcast %cst_5 : f32 to vector<32x128xf32>
    %39 = vector.broadcast %cst_6 : f32 to vector<32x128xf32>
    %40 = arith.select %31, %38, %39 : vector<32x128xi1>, vector<32x128xf32>
    %cst_11 = arith.constant 1.000000e+00 : f32
    %41 = vector.broadcast %cst_11 : f32 to vector<32x128xf32>
    %42 = arith.subf %41, %34 : vector<32x128xf32>
    %43 = arith.mulf %42, %42 : vector<32x128xf32>
    %44 = arith.mulf %40, %43 : vector<32x128xf32>
    %45 = arith.mulf %44, %37 : vector<32x128xf32>
    %46 = vector.shape_cast %45 : vector<32x128xf32> to vector<4x8x128xf32>
    %cst_12 = arith.constant dense<0.000000e+00> : vector<8x128xf32>
    %47 = vector.multi_reduction <add>, %46, %cst_12 [0] : vector<4x8x128xf32> to vector<8x128xf32>
    %48 = arith.addf %22, %47 : vector<8x128xf32>
    %c1_i32 = arith.constant 1 : i32
    %49 = vector.shape_cast %48 : vector<8x128xf32> to vector<1x8x128xf32>
    %c0_13 = arith.constant 0 : index
    %c0_14 = arith.constant 0 : index
    %c0_15 = arith.constant 0 : index
    %50 = vector.load %arg3[%c0_13, %c0_14, %c0_15] : memref<1x8x128xf32, #tpu.memory_space<vmem>>, vector<1x8x128xf32>
    tpu.vector_store %arg3[%c0_13, %c0_14, %c0_15], %49 {strides = array<i32>} : memref<1x8x128xf32, #tpu.memory_space<vmem>>, vector<1x8x128xf32>,
    return
  }
  func.func @transform_0(%arg0: i32) -> (i32, i32) {
    %c0_i32 = arith.constant 0 : i32
    %c0_i32_0 = arith.constant 0 : i32
    return %arg0, %c0_i32 : i32, i32
  }
  func.func @transform_1(%arg0: i32) -> (i32, i32) {
    %c0_i32 = arith.constant 0 : i32
    %c0_i32_0 = arith.constant 0 : i32
    return %arg0, %c0_i32 : i32, i32
  }
  func.func @transform_2(%arg0: i32) -> (i32, i32, i32) {
    %c0_i32 = arith.constant 0 : i32
    %c0_i32_0 = arith.constant 0 : i32
    %c0_i32_1 = arith.constant 0 : i32
    return %arg0, %c0_i32, %c0_i32_0 : i32, i32, i32
  }
}

</mosaic_0001>

<bundles_post_ra>
// kernel: tpu_custom_call.1
= control target key start
LH: loop header
LB: loop body
LE: loop exit
PB: predicated region body
PF: predicated region fallthrough
CT: control target
= control target key end

     0   :  { %v12_v0 = vlaneseq  ;;  %vm38_vm0 = vcmask 64512   ;;  %s321_s0 = inlined_call_operand.vmem [shape: f32[32,128], index: 0, kind: input, shape index: {}]   ;;  %s322_s1 = inlined_call_operand.vmem [shape: s32[32,8], index: 1, kind: input, shape index: {}]   ;;  %s323_s2 = inlined_call_operand.hbm [shape: f32[1,8,128], index: 2, kind: output, shape index: {}]  }
   0x1   :  { %v30_v1 = vld [vmem:[%s322_s1] sm:$0xff]  ;;  %v32_v2 = vld [vmem:[%s322_s1 + $0x10] sm:$0xff] }
   0x2   :  { %v34_v3 = vcvt.s32.f32 %v30_v1  ;;  %v36_v4 = vcvt.s32.f32 %v32_v2 }
   0x3   :  { %7 = vsyncpa [#allocation3], 0  ;;  %v13_v5 = vand.u32 127, %v12_v0  ;;  %v21_v7 = vshrl.u32 %v12_v0, 7  ;;  %v31_v11 = vld [vmem:[%s322_s1 + $0x8] sm:$0xff]  ;;  %v33_v12 = vld [vmem:[%s322_s1 + $0x18] sm:$0xff] }
   0x4   :  { %212 = vmatprep.mubr.msk.f32.mxu0 %vm38_vm0, %v34_v3  ;;  %215 = vmatprep.mubr.msk.f32.mxu1 %vm38_vm0, %v36_v4  ;;  %v35_v14 = vcvt.s32.f32 %v31_v11  ;;  %v37_v15 = vcvt.s32.f32 %v33_v12  ;;  %v255_v17 = vmov 1.0   ;;  %v27_v19 = vld [vmem:[%s321_s0 + $0x8] sm:$0xff]  ;;  %v29_v20 = vld [vmem:[%s321_s0 + $0x18] sm:$0xff]  ;;  %v26_v21 = vld [vmem:[%s321_s0] sm:$0xff]  ;;  %v256_v43 = vmov -0.75  }
   0x5   :  { %v14_v6 = vcvt.s32.f32 %v13_v5  ;;  %v22_v10 = vcvt.s32.f32 %v21_v7  ;;  %v141_v22 = vsub.f32 1.0, %v27_v19  ;;  %v143_v23 = vsub.f32 1.0, %v29_v20  ;;  %v28_v24 = vld [vmem:[%s321_s0 + $0x10] sm:$0xff]  ;;  %s257_s0 = smov [#allocation2]  }
   0x6   :  { %v140_v27 = vsub.f32 1.0, %v26_v21  ;;  %v142_v32 = vsub.f32 1.0, %v28_v24  ;;  %s191_s24 = sshll.u32 %s257_s0, 4  ;;  %s192_s24 = int_to_ptr.vmem [resolvable:$true] %s191_s24 }
   0x7   :  { %v15_v8 = vadd.f32 0.5, %v14_v6  ;;  %s231_s25 = scalar_lea.vmem %s192_s24, 128  ;;  %p236_p1 = scmp.lt.s32.totalorder %s192_s24, %s192_s24 }
   0x8   :  { %p232_p0 = scmp.ne.s32.totalorder %s192_s24, %s231_s25  ;;  %p237_p2 = scmp.lt.s32.totalorder %s231_s25, %s231_s25 }
   0x9   :  { %v16_v9 = vmul.f32 0.0625, %v15_v8 }
   0xa   :  { %p238_p3 = por %p237_p2, %p236_p1 }
   0xb   :  { %v17_v13 = vfloor.f32 %v16_v9 }
   0xc   :  { %p239_p4 = pnand %p238_p3, %p232_p0 }
   0xd   :  { %v18_v16 = vmul.f32 16.0, %v17_v13  ;;  %vm23_vm1 = vcmp.eq.f32.partialorder %v17_v13, %v22_v10 }
   0xe   :  { %210 = vmatprep.subr.msk.mxu0 %vm23_vm1, %v255_v17  ;;  %218 = vmatprep.subr.msk.mxu1 %vm23_vm1, %v255_v17 }
   0xf   :  { %211 = vmatpush3.msk.msra.mxu0 %vm23_vm1, %v255_v17  ;;  %219 = vmatpush3.msk.msra.mxu1 %vm23_vm1, %v255_v17  ;;  %v19_v18 = vsub.f32 %v14_v6, %v18_v16 }
  0x10   :  { %213 = vmatmul.mubr.msk.f32.vlgmr.msra.gmra.mrb[0].mxu0 %vm38_vm0, %v35_v14  ;;  %216 = vmatmul.mubr.msk.f32.vlgmr.msra.gmra.mrb[0].mxu1 %vm38_vm0, %v37_v15 }
  0xe3   :  { %v214_v25 = vpop.f32.mrb[0].mxu0  ;;  %v217_v26 = vpop.f32.mrb[0].mxu1 }
  0xe4   :  { %vm137_vm2 = vcmp.eq.f32.partialorder %v214_v25, %v19_v18  ;;  %vm139_vm3 = vcmp.eq.f32.partialorder %v217_v26, %v19_v18  ;;  %v117_v28 = vpop.f32.mrb[1].mxu0  ;;  %v127_v29 = vpop.f32.mrb[1].mxu1 }
  0xe5   :  { %v145_v30 = vsel %vm137_vm2, %v27_v19, %v141_v22  ;;  %v147_v31 = vsel %vm139_vm3, %v29_v20, %v143_v23  ;;  %vm136_vm4 = vcmp.eq.f32.partialorder %v117_v28, %v19_v18  ;;  %vm138_vm5 = vcmp.eq.f32.partialorder %v127_v29, %v19_v18 }
  0xe6   :  { %223 = vlog2.f32 %v145_v30  ;;  %v144_v33 = vsel %vm136_vm4, %v26_v21, %v140_v27  ;;  %v146_v34 = vsel %vm138_vm5, %v28_v24, %v142_v32  ;;  %v165_v35 = vsub.f32 1.0, %v145_v30 }
  0xe7   :  { %225 = vlog2.f32 %v147_v31  ;;  %v164_v36 = vsub.f32 1.0, %v144_v33  ;;  %v166_v38 = vsub.f32 1.0, %v146_v34  ;;  %v167_v40 = vsub.f32 1.0, %v147_v31 }
  0xe8   :  { %227 = vlog2.f32 %v144_v33  ;;  %v169_v37 = vmul.f32 %v165_v35, %v165_v35  ;;  %v161_v44 = vsel %vm137_vm2, -0.25, %v256_v43  ;;  %v160_v54 = vsel %vm136_vm4, -0.25, %v256_v43 }
  0xe9   :  { %229 = vlog2.f32 %v146_v34  ;;  %v168_v45 = vmul.f32 %v164_v36, %v164_v36  ;;  %v170_v51 = vmul.f32 %v166_v38, %v166_v38  ;;  %v171_v53 = vmul.f32 %v167_v40, %v167_v40 }
  0xea   :  { %v173_v47 = vmul.f32 %v169_v37, %v161_v44  ;;  %v162_v59 = vsel %vm138_vm5, -0.25, %v256_v43  ;;  %v163_v0 = vsel %vm139_vm3, -0.25, %v256_v43 }
  0xeb   :  { %v172_v57 = vmul.f32 %v168_v45, %v160_v54  ;;  %v174_v62 = vmul.f32 %v170_v51, %v162_v59  ;;  %v175_v1 = vmul.f32 %v171_v53, %v163_v0 }
  0xf0   :  { %v224_v39 = vpop.eup %223 }
  0xf1   :  { %v226_v41 = vpop.eup %225  ;;  %v151_v42 = vmul.f32 0.6931472, %v224_v39 }
  0xf2   :  { %v228_v46 = vpop.eup %227  ;;  %v155_v49 = vmul.f32 0.6931472, %v226_v41 }
  0xf3   :  { %v157_v48 = vmax.f32 %v151_v42, -100.0  ;;  %v149_v50 = vmul.f32 0.6931472, %v228_v46  ;;  %v230_v52 = vpop.eup %229 }
  0xf4   :  { %v153_v58 = vmul.f32 0.6931472, %v230_v52  ;;  %v159_v63 = vmax.f32 %v155_v49, -100.0 }
  0xf5   :  { %v177_v55 = vmul.f32 %v173_v47, %v157_v48  ;;  %v156_v56 = vmax.f32 %v149_v50, -100.0 }
  0xf6   :  { %v158_v61 = vmax.f32 %v153_v58, -100.0  ;;  %v179_v4 = vmul.f32 %v175_v1, %v159_v63 }
  0xf7   :  { %v176_v60 = vmul.f32 %v172_v57, %v156_v56 }
  0xf8   :  { %v178_v2 = vmul.f32 %v174_v62, %v158_v61 }
  0xf9   :  { %v180_v3 = vadd.f32 %v177_v55, %v176_v60 }
  0xfb   :  { %v181_v5 = vadd.f32 %v180_v3, %v178_v2 }
  0xfd   :  { %v182_v6 = vadd.f32 %v181_v5, %v179_v4 }
  0xff   :  { %184 = vst [vmem:[#allocation2] sm:$0xff] %v182_v6 }
 0x100   :  { %242 = shalt.err (!%p239_p4)
}
 0x101   :  { %s243_s28 = scalar_lea.hbm %s323_s2, 128 }
 0x102   :  { %p244_p5 = scmp.ne.s32.totalorder %s323_s2, %s243_s28  ;;  %p247_p6 = scmp.lt.u32.totalorder %s243_s28, %s323_s2 }
 0x104   :  { %p249_p7 = pnand %p247_p6, %p244_p5 }
 0x106   :  { %252 = shalt.err (!%p249_p7)
}
 0x107   :  { %194 = dma.vmem_to_hbm [thread:$0]  %s192_s24, 128, %s323_s2, [#allocation3]  }
 0x108   :  { %253 = dma.done.wait [#allocation3], 128  }
 0x109   :  { %254 = vsyncadd [#allocation3], 4294967168 }
 0x10a   :  { %198 = vsyncpa [#allocation3], 1 }

</bundles_post_ra>
